<compile_context>
chip_gen: v6e
topology: v6e:2x2x1
jax: 0.10.0
libtpu: 0.0.40
codegen_flags: <defaults>
</compile_context>

<pallas_src>
import jax
import jax.numpy as jnp
from jax.experimental import pallas as pl
from jax.experimental.pallas import tpu as pltpu

_LANE = 128
_SUBLANE = 8
_TARGET_BLOCK_BYTES = 2 * 1024 * 1024   # ~2 MiB per input block (4096 f32 rows)


def _round_up(x, m):
    return ((x + m - 1) // m) * m


def _make_stats_kernel(nc_per_core, tr, rows_valid, needs_mask):
    """Build the streaming-reduction kernel (all tile params are static)."""

    def kernel(pred_ref, true_ref, stats_ref, acc_tp, acc_fp, acc_fn):
        c = pl.program_id(0)          # reduction split (v7x core split)
        j = pl.program_id(2)          # reduction step within this split

        @pl.when(j == 0)
        def _():
            acc_tp[...] = jnp.zeros_like(acc_tp)
            acc_fp[...] = jnp.zeros_like(acc_fp)
            acc_fn[...] = jnp.zeros_like(acc_fn)

        m2 = pred_ref[0].astype(jnp.float32)    # y_pred tile, (tr, 128)
        m1 = true_ref[0].astype(jnp.float32)    # y_true tile, (tr, 128)

        if needs_mask:
            # Mask rows that belong to the ragged tail / duplicated tail block.
            g = c * nc_per_core + j             # unclamped global block index
            row = g * tr + jax.lax.broadcasted_iota(jnp.int32, (tr, _LANE), 0)
            valid = (row < rows_valid).astype(jnp.float32)
            m1 = m1 * valid
            m2 = m2 * valid

        tp = m1 * m2                            # true-pos terms
        fp = m2 - tp                            # m2*(1-m1), non-negative
        fn = m1 - tp                            # m1*(1-m2), non-negative
        # Vreg-wise (8,128) accumulation: reshape splits exactly on vreg tiles.
        acc_tp[...] += jnp.sum(tp.reshape(-1, _SUBLANE, _LANE), axis=0)
        acc_fp[...] += jnp.sum(fp.reshape(-1, _SUBLANE, _LANE), axis=0)
        acc_fn[...] += jnp.sum(fn.reshape(-1, _SUBLANE, _LANE), axis=0)

        @pl.when(j == nc_per_core - 1)
        def _():
            stats_ref[0, 0] = acc_tp[...]
            stats_ref[0, 1] = acc_fp[...]
            stats_ref[0, 2] = acc_fn[...]

    return kernel


def focal_tversky_loss(y_pred, y_true, *, gamma=0.75, alpha=0.3, beta=0.7,
                       smooth=0.001):
    assert y_pred.shape == y_true.shape
    b = y_pred.shape[0]

    # Flatten like torch's .view(batch_size, -1); layout glue stays in JAX.
    pred2d = y_pred.reshape(b, -1)
    true2d = y_true.reshape(b, -1)
    n = pred2d.shape[1]

    def _packing(dt):
        return max(1, 4 // jnp.dtype(dt).itemsize)

    # Sublane alignment for the narrowest dtype involved (f32->8, bf16->16, ...)
    align_rows = _SUBLANE * max(_packing(y_pred.dtype), _packing(y_true.dtype))
    elems_align = _LANE * align_rows

    # Pad only to the small lane/sublane alignment (no padding to the full tile
    # size); zero padding contributes nothing to tp/fp/fn so it is exact.
    n_pad = _round_up(n, elems_align)
    if n_pad != n:
        pad = ((0, 0), (0, n_pad - n))
        pred2d = jnp.pad(pred2d, pad)
        true2d = jnp.pad(true2d, pad)
    r_pad = n_pad // _LANE                       # rows of 128 lanes, align-mult.
    pred3d = pred2d.reshape(b, r_pad, _LANE)
    true3d = true2d.reshape(b, r_pad, _LANE)

    # v7x: split the reduction across both TensorCores when B == 1.
    core_split = 2 if (b == 1 and r_pad >= 2 * align_rows) else 1

    # Dtype-aware block size: ~2 MiB per block for the widest input.
    max_itemsize = max(jnp.dtype(y_pred.dtype).itemsize,
                       jnp.dtype(y_true.dtype).itemsize)
    max_rows = max(align_rows,
                   (_TARGET_BLOCK_BYTES // (_LANE * max_itemsize))
                   // align_rows * align_rows)

    # Aim for >= 4 reduction steps per core so DMA overlaps compute.
    tr = _round_up(pl.cdiv(r_pad, 4 * core_split), align_rows)
    tr = max(align_rows, min(tr, max_rows, r_pad))

    nc_total = pl.cdiv(r_pad, tr)
    nc_per_core = pl.cdiv(nc_total, core_split)
    needs_mask = (core_split * nc_per_core * tr) != r_pad

    kernel = _make_stats_kernel(nc_per_core, tr, r_pad, needs_mask)

    def in_map(c, i, j):
        # Clamp the (possibly out-of-range) tail block; its rows get masked.
        return (i, jnp.minimum(c * nc_per_core + j, nc_total - 1), 0)

    def out_map(c, i, j):
        return (c * b + i, 0, 0, 0)

    stats = pl.pallas_call(
        kernel,
        out_shape=jax.ShapeDtypeStruct((core_split * b, 3, _SUBLANE, _LANE),
                                       jnp.float32),
        grid_spec=pltpu.PrefetchScalarGridSpec(
            num_scalar_prefetch=0,
            grid=(core_split, b, nc_per_core),
            in_specs=[
                pl.BlockSpec((1, tr, _LANE), in_map),
                pl.BlockSpec((1, tr, _LANE), in_map),
            ],
            out_specs=pl.BlockSpec((1, 3, _SUBLANE, _LANE), out_map),
            scratch_shapes=[
                pltpu.VMEM((_SUBLANE, _LANE), jnp.float32),
                pltpu.VMEM((_SUBLANE, _LANE), jnp.float32),
                pltpu.VMEM((_SUBLANE, _LANE), jnp.float32),
            ]),
        compiler_params=pltpu.CompilerParams(
            dimension_semantics=("parallel", "parallel", "arbitrary")),
    )(pred3d, true3d)   # native dtypes in; widened to f32 inside the kernel

    # Tiny O(B) epilogue in plain JAX (lane/sublane reduce + score math).
    per_block = jnp.sum(stats, axis=(2, 3))                       # (cs*b, 3)
    sums = jnp.sum(per_block.reshape(core_split, b, 3), axis=0)   # (b, 3)
    tp, fp, fn = sums[:, 0], sums[:, 1], sums[:, 2]
    score = (tp + smooth) / (tp + alpha * fp + beta * fn + smooth)
    tversky = jnp.sum(score) / b
    # pt_1 = 1 - tversky ; loss = (1 - pt_1) ** gamma = tversky ** gamma
    return jnp.power(tversky, gamma)


def _reference(y_pred, y_true, *, gamma=0.75, alpha=0.3, beta=0.7, smooth=0.001):
    b = y_pred.shape[0]
    m1 = y_true.reshape(b, -1).astype(jnp.float32)
    m2 = y_pred.reshape(b, -1).astype(jnp.float32)
    tp = jnp.sum(m1 * m2, axis=1)
    fp = jnp.sum(m2 * (1 - m1), axis=1)
    fn = jnp.sum(m1 * (1 - m2), axis=1)
    score = (tp + smooth) / (tp + alpha * fp + beta * fn + smooth)
    tversky = jnp.sum(score) / b
    return jnp.power(tversky, gamma)


if __name__ == "__main__":
    key = jax.random.PRNGKey(0)
    k1, k2, k3, k4 = jax.random.split(key, 4)

    # Case 1: small 2D-segmentation-style NCHW input, both f32 (spec shape).
    y_pred = jax.nn.sigmoid(jax.random.normal(k1, (2, 4, 16, 16), jnp.float32))
    y_true = jax.random.bernoulli(k2, 0.5, (2, 4, 16, 16)).astype(jnp.float32)
    loss = jax.block_until_ready(focal_tversky_loss(y_pred, y_true))
    ref = _reference(y_pred, y_true)
    assert jnp.allclose(loss, ref, rtol=1e-4, atol=1e-5), (loss, ref)

    # Case 2: B=1 volumetric input with lane-unaligned N, mask streamed as bf16
    # (exercises ragged-tile masking, mixed dtypes and the 2-way core split).
    shape = (1, 3, 17, 19, 19)
    y_pred2 = jax.nn.sigmoid(jax.random.normal(k3, shape, jnp.float32))
    y_true2 = jax.random.bernoulli(k4, 0.5, shape).astype(jnp.bfloat16)
    loss2 = jax.block_until_ready(focal_tversky_loss(y_pred2, y_true2))
    ref2 = _reference(y_pred2, y_true2)
    assert jnp.allclose(loss2, ref2, rtol=1e-4, atol=1e-5), (loss2, ref2)

    print("KERNEL_OK")
</pallas_src>

<mosaic_0001>
module attributes {stable_mosaic.version = 11 : i64} {
  func.func @kernel(%arg0: i32, %arg1: i32, %arg2: i32, %arg3: memref<1x8x128xf32, #tpu.memory_space<vmem>>, %arg4: memref<1x8x128xf32, #tpu.memory_space<vmem>>, %arg5: memref<1x3x8x128xf32, #tpu.memory_space<vmem>>, %arg6: memref<8x128xf32, #tpu.memory_space<vmem>>, %arg7: memref<8x128xf32, #tpu.memory_space<vmem>>, %arg8: memref<8x128xf32, #tpu.memory_space<vmem>>) attributes {dimension_semantics = [#tpu.dimension_semantics<parallel>, #tpu.dimension_semantics<parallel>, #tpu.dimension_semantics<arbitrary>], iteration_bounds = array<i64: 1, 2, 1>, scalar_prefetch = 0 : i64, scratch_operands = 3 : i64, tpu.core_type = #tpu.core_type<tc>, window_params = [{transform_indices = @transform_0, window_bounds = array<i64: 1, 8, 128>}, {transform_indices = @transform_1, window_bounds = array<i64: 1, 8, 128>}, {transform_indices = @transform_2, window_bounds = array<i64: 1, 3, 8, 128>}]} {
    %c0_i32 = arith.constant 0 : i32
    %0 = arith.cmpi eq, %arg2, %c0_i32 : i32
    %1 = arith.extui %0 : i1 to i32
    %c0_i32_0 = arith.constant 0 : i32
    %2 = arith.cmpi ne, %1, %c0_i32_0 : i32
    scf.if %2 {
      %cst_22 = arith.constant 0.000000e+00 : f32
      %28 = vector.broadcast %cst_22 : f32 to vector<8x128xf32>
      %c0_23 = arith.constant 0 : index
      %c0_24 = arith.constant 0 : index
      %29 = vector.load %arg6[%c0_23, %c0_24] : memref<8x128xf32, #tpu.memory_space<vmem>>, vector<8x128xf32>
      tpu.vector_store %arg6[%c0_23, %c0_24], %28 {strides = array<i32>} : memref<8x128xf32, #tpu.memory_space<vmem>>, vector<8x128xf32>,
      %cst_25 = arith.constant 0.000000e+00 : f32
      %30 = vector.broadcast %cst_25 : f32 to vector<8x128xf32>
      %c0_26 = arith.constant 0 : index
      %c0_27 = arith.constant 0 : index
      %31 = vector.load %arg7[%c0_26, %c0_27] : memref<8x128xf32, #tpu.memory_space<vmem>>, vector<8x128xf32>
      tpu.vector_store %arg7[%c0_26, %c0_27], %30 {strides = array<i32>} : memref<8x128xf32, #tpu.memory_space<vmem>>, vector<8x128xf32>,
      %cst_28 = arith.constant 0.000000e+00 : f32
      %32 = vector.broadcast %cst_28 : f32 to vector<8x128xf32>
      %c0_29 = arith.constant 0 : index
      %c0_30 = arith.constant 0 : index
      %33 = vector.load %arg8[%c0_29, %c0_30] : memref<8x128xf32, #tpu.memory_space<vmem>>, vector<8x128xf32>
      tpu.vector_store %arg8[%c0_29, %c0_30], %32 {strides = array<i32>} : memref<8x128xf32, #tpu.memory_space<vmem>>, vector<8x128xf32>,
    } else {
    }
    %c0 = arith.constant 0 : index
    %c0_1 = arith.constant 0 : index
    %c0_2 = arith.constant 0 : index
    %3 = vector.load %arg3[%c0, %c0_1, %c0_2] : memref<1x8x128xf32, #tpu.memory_space<vmem>>, vector<1x8x128xf32>
    %4 = vector.shape_cast %3 : vector<1x8x128xf32> to vector<8x128xf32>
    %c0_3 = arith.constant 0 : index
    %c0_4 = arith.constant 0 : index
    %c0_5 = arith.constant 0 : index
    %5 = vector.load %arg4[%c0_3, %c0_4, %c0_5] : memref<1x8x128xf32, #tpu.memory_space<vmem>>, vector<1x8x128xf32>
    %6 = vector.shape_cast %5 : vector<1x8x128xf32> to vector<8x128xf32>
    %7 = arith.mulf %6, %4 : vector<8x128xf32>
    %8 = arith.subf %4, %7 : vector<8x128xf32>
    %9 = arith.subf %6, %7 : vector<8x128xf32>
    %c0_6 = arith.constant 0 : index
    %c0_7 = arith.constant 0 : index
    %10 = vector.load %arg6[%c0_6, %c0_7] : memref<8x128xf32, #tpu.memory_space<vmem>>, vector<8x128xf32>
    %11 = vector.shape_cast %7 : vector<8x128xf32> to vector<1x8x128xf32>
    %cst = arith.constant dense<0.000000e+00> : vector<8x128xf32>
    %12 = vector.multi_reduction <add>, %11, %cst [0] : vector<1x8x128xf32> to vector<8x128xf32>
    %13 = arith.addf %10, %12 : vector<8x128xf32>
    %c0_8 = arith.constant 0 : index
    %c0_9 = arith.constant 0 : index
    %14 = vector.load %arg6[%c0_8, %c0_9] : memref<8x128xf32, #tpu.memory_space<vmem>>, vector<8x128xf32>
    tpu.vector_store %arg6[%c0_8, %c0_9], %13 {strides = array<i32>} : memref<8x128xf32, #tpu.memory_space<vmem>>, vector<8x128xf32>,
    %c0_10 = arith.constant 0 : index
    %c0_11 = arith.constant 0 : index
    %15 = vector.load %arg7[%c0_10, %c0_11] : memref<8x128xf32, #tpu.memory_space<vmem>>, vector<8x128xf32>
    %16 = vector.shape_cast %8 : vector<8x128xf32> to vector<1x8x128xf32>
    %cst_12 = arith.constant dense<0.000000e+00> : vector<8x128xf32>
    %17 = vector.multi_reduction <add>, %16, %cst_12 [0] : vector<1x8x128xf32> to vector<8x128xf32>
    %18 = arith.addf %15, %17 : vector<8x128xf32>
    %c0_13 = arith.constant 0 : index
    %c0_14 = arith.constant 0 : index
    %19 = vector.load %arg7[%c0_13, %c0_14] : memref<8x128xf32, #tpu.memory_space<vmem>>, vector<8x128xf32>
    tpu.vector_store %arg7[%c0_13, %c0_14], %18 {strides = array<i32>} : memref<8x128xf32, #tpu.memory_space<vmem>>, vector<8x128xf32>,
    %c0_15 = arith.constant 0 : index
    %c0_16 = arith.constant 0 : index
    %20 = vector.load %arg8[%c0_15, %c0_16] : memref<8x128xf32, #tpu.memory_space<vmem>>, vector<8x128xf32>
    %21 = vector.shape_cast %9 : vector<8x128xf32> to vector<1x8x128xf32>
    %cst_17 = arith.constant dense<0.000000e+00> : vector<8x128xf32>
    %22 = vector.multi_reduction <add>, %21, %cst_17 [0] : vector<1x8x128xf32> to vector<8x128xf32>
    %23 = arith.addf %20, %22 : vector<8x128xf32>
    %c0_18 = arith.constant 0 : index
    %c0_19 = arith.constant 0 : index
    %24 = vector.load %arg8[%c0_18, %c0_19] : memref<8x128xf32, #tpu.memory_space<vmem>>, vector<8x128xf32>
    tpu.vector_store %arg8[%c0_18, %c0_19], %23 {strides = array<i32>} : memref<8x128xf32, #tpu.memory_space<vmem>>, vector<8x128xf32>,
    %c0_i32_20 = arith.constant 0 : i32
    %25 = arith.cmpi eq, %arg2, %c0_i32_20 : i32
    %26 = arith.extui %25 : i1 to i32
    %c0_i32_21 = arith.constant 0 : i32
    %27 = arith.cmpi ne, %26, %c0_i32_21 : i32
    scf.if %27 {
      %c0_22 = arith.constant 0 : index
      %c0_23 = arith.constant 0 : index
      %28 = vector.load %arg6[%c0_22, %c0_23] : memref<8x128xf32, #tpu.memory_space<vmem>>, vector<8x128xf32>
      %c0_24 = arith.constant 0 : index
      %c0_25 = arith.constant 0 : index
      %c0_26 = arith.constant 0 : index
      %c0_27 = arith.constant 0 : index
      %29 = vector.load %arg5[%c0_24, %c0_25, %c0_26, %c0_27] : memref<1x3x8x128xf32, #tpu.memory_space<vmem>>, vector<1x1x8x128xf32>
      %30 = vector.shape_cast %29 : vector<1x1x8x128xf32> to vector<8x128xf32>
      %31 = vector.shape_cast %28 : vector<8x128xf32> to vector<1x1x8x128xf32>
      tpu.vector_store %arg5[%c0_24, %c0_25, %c0_26, %c0_27], %31 {strides = array<i32>} : memref<1x3x8x128xf32, #tpu.memory_space<vmem>>, vector<1x1x8x128xf32>,
      %c0_28 = arith.constant 0 : index
      %c0_29 = arith.constant 0 : index
      %32 = vector.load %arg7[%c0_28, %c0_29] : memref<8x128xf32, #tpu.memory_space<vmem>>, vector<8x128xf32>
      %c0_30 = arith.constant 0 : index
      %c1 = arith.constant 1 : index
      %c0_31 = arith.constant 0 : index
      %c0_32 = arith.constant 0 : index
      %33 = vector.load %arg5[%c0_30, %c1, %c0_31, %c0_32] : memref<1x3x8x128xf32, #tpu.memory_space<vmem>>, vector<1x1x8x128xf32>
      %34 = vector.shape_cast %33 : vector<1x1x8x128xf32> to vector<8x128xf32>
      %35 = vector.shape_cast %32 : vector<8x128xf32> to vector<1x1x8x128xf32>
      tpu.vector_store %arg5[%c0_30, %c1, %c0_31, %c0_32], %35 {strides = array<i32>} : memref<1x3x8x128xf32, #tpu.memory_space<vmem>>, vector<1x1x8x128xf32>,
      %c0_33 = arith.constant 0 : index
      %c0_34 = arith.constant 0 : index
      %36 = vector.load %arg8[%c0_33, %c0_34] : memref<8x128xf32, #tpu.memory_space<vmem>>, vector<8x128xf32>
      %c0_35 = arith.constant 0 : index
      %c2 = arith.constant 2 : index
      %c0_36 = arith.constant 0 : index
      %c0_37 = arith.constant 0 : index
      %37 = vector.load %arg5[%c0_35, %c2, %c0_36, %c0_37] : memref<1x3x8x128xf32, #tpu.memory_space<vmem>>, vector<1x1x8x128xf32>
      %38 = vector.shape_cast %37 : vector<1x1x8x128xf32> to vector<8x128xf32>
      %39 = vector.shape_cast %36 : vector<8x128xf32> to vector<1x1x8x128xf32>
      tpu.vector_store %arg5[%c0_35, %c2, %c0_36, %c0_37], %39 {strides = array<i32>} : memref<1x3x8x128xf32, #tpu.memory_space<vmem>>, vector<1x1x8x128xf32>,
    } else {
    }
    return
  }
  func.func @transform_0(%arg0: i32, %arg1: i32, %arg2: i32) -> (i32, i32, i32) {
    %c1_i32 = arith.constant 1 : i32
    %0 = arith.muli %arg0, %c1_i32 : i32
    %1 = arith.addi %0, %arg2 : i32
    %c0_i32 = arith.constant 0 : i32
    %2 = arith.minsi %1, %c0_i32 : i32
    %c0_i32_0 = arith.constant 0 : i32
    %c0_i32_1 = arith.constant 0 : i32
    return %arg1, %2, %c0_i32_0 : i32, i32, i32
  }
  func.func @transform_1(%arg0: i32, %arg1: i32, %arg2: i32) -> (i32, i32, i32) {
    %c1_i32 = arith.constant 1 : i32
    %0 = arith.muli %arg0, %c1_i32 : i32
    %1 = arith.addi %0, %arg2 : i32
    %c0_i32 = arith.constant 0 : i32
    %2 = arith.minsi %1, %c0_i32 : i32
    %c0_i32_0 = arith.constant 0 : i32
    %c0_i32_1 = arith.constant 0 : i32
    return %arg1, %2, %c0_i32_0 : i32, i32, i32
  }
  func.func @transform_2(%arg0: i32, %arg1: i32, %arg2: i32) -> (i32, i32, i32, i32) {
    %c2_i32 = arith.constant 2 : i32
    %0 = arith.muli %arg0, %c2_i32 : i32
    %1 = arith.addi %0, %arg1 : i32
    %c0_i32 = arith.constant 0 : i32
    %c0_i32_0 = arith.constant 0 : i32
    %c0_i32_1 = arith.constant 0 : i32
    %c0_i32_2 = arith.constant 0 : i32
    return %1, %c0_i32, %c0_i32_0, %c0_i32_1 : i32, i32, i32, i32
  }
}

</mosaic_0001>

<bundles_post_ra>
// kernel: tpu_custom_call.1
= control target key start
LH: loop header
LB: loop body
LE: loop exit
PB: predicated region body
PF: predicated region fallthrough
CT: control target
= control target key end

     0   :  { %7 = vsyncpa [#allocation6], 0  ;;  %s838_s0 = inlined_call_operand.hbm [shape: f32[2,8,128], index: 0, kind: input, shape index: {}]   ;;  %s839_s1 = inlined_call_operand.hbm [shape: f32[2,8,128], index: 1, kind: input, shape index: {}]   ;;  %s840_s2 = inlined_call_operand.hbm [shape: f32[2,3,8,128], index: 2, kind: output, shape index: {}]  }
   0x1   :  { %9 = vsyncpa [#allocation6 + $0x1], 0 }
   0x2   :  { %10 = vsyncpa [#allocation9], 0 }
   0x3   :  { %12 = vsyncpa [#allocation9 + $0x1], 0 }
   0x4   :  { %13 = vsyncpa [#allocation7], 0 }
   0x5   :  { %15 = vsyncpa [#allocation7 + $0x1], 0  ;;  %s662_s9 = smov 0   ;;  %s664_s10 = smov 0  }
   0x6   :  { %s666_s11 = smov 0   ;;  %s668_s12 = smov 0  }
   0x7   :  { %s670_s13 = smov 0   ;;  %s672_s14 = smov 0  }
   0x8 LB: > { %s413_s15 = sadd.s32 4294967295, %s640_s14   ;;  %s414_s16 = sadd.s32 4294967294, %s640_s14   ;;  %s640_s14 = sphi %s672_s14, %s21_s14   ;;  %s636_s13 = sphi %s670_s13, %s852_s13   ;;  %s632_s12 = sphi %s668_s12, %s851_s12   ;;  %s628_s11 = sphi %s666_s11, %s850_s11   ;;  %s624_s10 = sphi %s664_s10, %s849_s10   ;;  %s620_s9 = sphi %s662_s9, %s848_s9  }
   0x9   : > { %s36_s17 = sadd.s32 1, %s636_s13  ;;  %s55_s18 = sadd.s32 1, %s628_s11 }
   0xa   : > { %p38_p0 = scmp.ge.s32.totalorder %s36_s17, 2  ;;  %p62_p1 = scmp.ne.s32.totalorder %s628_s11, %s624_s10 }
   0xb   : > { %p63_p2 = scmp.eq.s32.totalorder %s640_s14, 0  ;;  %p68_p3 = scmp.ne.s32.totalorder %s624_s10, %s620_s9 }
   0xc   : > { %s854_s17 = smov (%p38_p0, %s36_s17), 0  ;;  %p69_p5 = scmp.eq.s32.totalorder %s413_s15, 0 }
   0xd   : > { %p703_p4 = por %p63_p2, %p62_p1  ;;  %s50_s20 = ssub.s32 %s636_s13, %s854_s17 }
   0xe   : > { %p130_p6 = scmp.eq.s32.totalorder %s413_s15, 1  ;;  %p53_p7 = scmp.eq.s32.totalorder %s50_s20, 0 }
   0xf   : > { %p709_p8 = por %p69_p5, %p68_p3  ;;  %p136_p10 = scmp.eq.s32.totalorder %s414_s16, 1 }
  0x10   : > { %p713_p9 = por %p130_p6, %p62_p1  ;;  %p448_p13 = scmp.lt.s32.totalorder %s640_s14, 2 }
  0x11   : > { %s718_s23 = scalar_select %p53_p7, %s628_s11, %s55_s18  }
  0x12   : > { %p720_p11 = por %p136_p10, %p68_p3  ;;  %s727_s25 = sand.u32 1, %s628_s11  }
  0x13   : > { %s417_s26 = sshll.u32 %s727_s25, 3  ;;  %s418_s27 = sshll.u32 %s636_s13, 7 }
  0x14   : > { %s169_s30 = scalar_lea.hbm %s838_s0, %s418_s27  ;;  %s160_s3 = scalar_lea.vmem [#allocation5], %s417_s26 }
  0x15   : > { %s171_s4 = sshll.u32 %s160_s3, 4  ;;  %p736_p0 = pnand %p448_p13, %p703_p4  ;;  %s172_s4 = int_to_ptr.vmem [resolvable:$true] %s171_s4 }
  0x16   : > { %p421_p1 = scmp.ge.s32.totalorder %s640_s14, 1  ;;  %p198_p2 = scmp.lt.s32.totalorder %s640_s14, 3 }
  0x17   : > { %s157_s6 = scalar_lea.sflag [#allocation6], %s727_s25  ;;  %p502_p3 = pneg %p736_p0 }
  0x18   : > { %s513_s7 = scalar_lea.vmem %s172_s4, 128  ;;  %s642_s8 = smov [#allocation5]  }
  0x19   : > { %p514_p5 = scmp.ne.s32.totalorder %s172_s4, %s513_s7  ;;  %s518_s15 = sshll.u32 %s642_s8, 4  ;;  %s519_s15 = int_to_ptr.vmem [resolvable:$false] %s518_s15 }
  0x1a   : > { %s520_s16 = scalar_lea.vmem %s519_s15, 256  ;;  %p521_p4 = scmp.lt.s32.totalorder %s172_s4, %s519_s15 }
  0x1b   : > { %p516_p6 = pnand %p514_p5, %p502_p3  ;;  %p522_p10 = scmp.lt.s32.totalorder %s520_s16, %s513_s7 }
  0x1d   : > { %p517_p7 = pneg %p516_p6  ;;  %p523_p13 = por %p522_p10, %p521_p4 }
  0x1f   : > { %p524_p12 = pnand %p523_p13, %p517_p7 }
  0x21   : > { %527 = shalt.err (!%p524_p12)
}
  0x22   : > { %440 = dma.hbm_to_vmem [thread:$0]  (!%p736_p0), %s169_s30, 128, %s172_s4, %s157_s6  }
  0x23   : > { %p754_p5 = pnand %p421_p1, %p198_p2  ;;  %s191_s28 = scalar_lea.hbm %s839_s1, %s418_s27 }
  0x24   : > { %s182_s29 = scalar_lea.vmem [#allocation8], %s417_s26  ;;  %s179_s7 = scalar_lea.sflag [#allocation9], %s727_s25 }
  0x25   : > { %s193_s3 = sshll.u32 %s182_s29, 4  ;;  %s643_s30 = smov [#allocation8]   ;;  %s194_s3 = int_to_ptr.vmem [resolvable:$true] %s193_s3 }
  0x26   : > { %s541_s8 = scalar_lea.vmem %s194_s3, 128  ;;  %s546_s4 = sshll.u32 %s643_s30, 4  ;;  %s547_s4 = int_to_ptr.vmem [resolvable:$false] %s546_s4 }
  0x27   : > { %p542_p12 = scmp.ne.s32.totalorder %s194_s3, %s541_s8  ;;  %s548_s6 = scalar_lea.vmem %s547_s4, 256 }
  0x28   : > { %p549_p1 = scmp.lt.s32.totalorder %s194_s3, %s547_s4  ;;  %p550_p2 = scmp.lt.s32.totalorder %s548_s6, %s541_s8 }
  0x29   : > { %p544_p6 = pnand %p542_p12, %p502_p3 }
  0x2a   : > { %p551_p4 = por %p550_p2, %p549_p1 }
  0x2b   : > { %p545_p7 = pneg %p544_p6 }
  0x2d   : > { %p552_p10 = pnand %p551_p4, %p545_p7 }
  0x2f   : > { %555 = shalt.err (!%p552_p10)
}
  0x30   : > { %443 = dma.hbm_to_vmem [thread:$0]  (!%p736_p0), %s191_s28, 128, %s194_s3, %s179_s7  }
  0x31   : > { %202 = sbr.rel (%p754_p5) target bundleno = 83 (0x53), region = 28  ;;  %s770_s25 = sand.u32 (!%p754_p5), 1, %s624_s10  }
  0x32   : > { %s422_s26 = sshll.u32 (!%p754_p5), %s770_s25, 3  ;;  %s205_s27 = scalar_lea.sflag (!%p754_p5), [#allocation6], %s770_s25 }
  0x33   : > { %s208_s15 = scalar_lea.vmem (!%p754_p5), [#allocation5], %s422_s26 }
  0x36   : > { %607 = dma.done.wait (%p709_p8), %s205_s27, 128  }
  0x37   : > { %609 = vsyncadd (%p709_p8), %s205_s27, 4294967168  ;;  %s214_s5 = scalar_lea.sflag [#allocation9], %s770_s25  ;;  %s217_s16 = scalar_lea.vmem [#allocation8], %s422_s26 }
  0x38   : > { %611 = dma.done.wait (%p709_p8), %s214_s5, 128  }
  0x39   : > { %613 = vsyncadd (%p709_p8), %s214_s5, 4294967168  ;;  %s429_s18 = smul.u32 24, %s770_s25  ;;  %v258_v0 = vld [vmem:[%s208_s15] sm:$0xff]  ;;  %v259_v1 = vld [vmem:[%s217_s16] sm:$0xff]  ;;  %s644_s8 = smov [#allocation10]  }
  0x3a   : > { %s430_s19 = smul.u32 384, %s632_s12  ;;  %v260_v2 = vmul.f32 %v259_v1, %v258_v0  ;;  %s287_s12 = scalar_lea.sflag [#allocation7], %s770_s25 }
  0x3b   : > { %s242_s20 = scalar_lea.vmem [#allocation10], %s429_s18  ;;  %s560_s30 = sshll.u32 %s644_s8, 4  ;;  %s561_s30 = int_to_ptr.vmem [resolvable:$false] %s560_s30 }
  0x3c   : > { %s302_s28 = sshll.u32 %s242_s20, 4  ;;  %279 = vst [vmem:[%s242_s20] sm:$0xff] %v260_v2  ;;  %v261_v3 = vsub.f32 %v258_v0, %v260_v2  ;;  %v262_v4 = vsub.f32 %v259_v1, %v260_v2  ;;  %s790_s3 = scalar_lea.hbm %s840_s2, %s430_s19  ;;  %s785_s28 = int_to_ptr.vmem [resolvable:$true] %s302_s28 }
  0x3d   : > { %s556_s7 = scalar_lea.vmem %s785_s28, 384  ;;  %s562_s4 = scalar_lea.vmem %s561_s30, 768 }
  0x3e   : > { %424 = vst [vmem:[%s242_s20 + $0x8] sm:$0xff] %v261_v3  ;;  %425 = vst [vmem:[%s242_s20 + $0x10] sm:$0xff] %v262_v4  ;;  %p557_p8 = scmp.ne.s32.totalorder %s785_s28, %s556_s7  ;;  %p563_p13 = scmp.lt.s32.totalorder %s785_s28, %s561_s30 }
  0x3f   : > { %p564_p5 = scmp.lt.s32.totalorder %s562_s4, %s556_s7 }
  0x40   : > { %p558_p0 = pnand %p557_p8, %p713_p9 }
  0x41   : > { %p565_p12 = por %p564_p5, %p563_p13 }
  0x42   : > { %p559_p3 = pneg %p558_p0 }
  0x44   : > { %p566_p6 = pnand %p565_p12, %p559_p3 }
  0x46   : > { %569 = shalt.err (!%p566_p6)
}
  0x47   : > { %s570_s6 = scalar_lea.hbm %s790_s3, 384  ;;  %s574_s15 = scalar_lea.hbm %s840_s2, 768 }
  0x48   : > { %p571_p7 = scmp.ne.s32.totalorder %s790_s3, %s570_s6  ;;  %p575_p4 = scmp.lt.s32.totalorder %s790_s3, %s840_s2 }
  0x49   : > { %p576_p10 = scmp.lt.s32.totalorder %s574_s15, %s570_s6 }
  0x4a   : > { %p572_p1 = pnand %p571_p7, %p713_p9 }
  0x4b   : > { %p577_p8 = por %p576_p10, %p575_p4 }
  0x4c   : > { %p573_p2 = pneg %p572_p1 }
  0x4e   : > { %p578_p0 = pnand %p577_p8, %p573_p2 }
  0x50   : > { %581 = shalt.err (!%p578_p0)
}
  0x51   : > { %s645_s18 = smov 128   ;;  %s646_s19 = smov 8  }
  0x52   : > { %435 = dma.vmem_to_hbm [thread:$0]  (%p713_p9), %s785_s28, 384, %s790_s3, %s287_s12, %s645_s18, %s645_s18, %s646_s19  }
  0x53 PF: > { %s317_s20 = sand.u32 1, %s620_s9   ;;  %p847_p3 = scmp.ge.s32.totalorder %s640_s14, 2 }
  0x54   : > { %s318_s21 = scalar_lea.sflag [#allocation7], %s317_s20 }
  0x55   : > { %p445_p13 = pnand %p847_p3, %p720_p11 }
  0x57   : > { %p446_p5 = pneg %p445_p13 }
  0x59   : > { %615 = dma.done.wait (%p446_p5), %s318_s21, 384  }
  0x5a   : > { %617 = vsyncadd (%p446_p5), %s318_s21, 4294966912  ;;  %s21_s14 = sadd.s32 1, %s640_s14   ;;  %s848_s9 = smov %s624_s10 }
  0x5b   : > { %p18_p12 = scmp.ge.s32.totalorder %s21_s14, 4   ;;  %s849_s10 = smov %s628_s11 }
  0x5c   : > { %s850_s11 = smov %s718_s23  ;;  %s851_s12 = smov %s636_s13 }
  0x5d   : > { %s852_s13 = smov %s854_s17  ;;  %20 = sbr.rel (!%p18_p12) target bundleno = 8 (0x8), region = 96 }
  0x62   :  { %323 = vsyncpa [#allocation6], 1 }
  0x63   :  { %325 = vsyncpa [#allocation6 + $0x1], 1 }
  0x64   :  { %326 = vsyncpa [#allocation9], 1 }
  0x65   :  { %328 = vsyncpa [#allocation9 + $0x1], 1 }
  0x66   :  { %329 = vsyncpa [#allocation7], 1 }
  0x67   :  { %331 = vsyncpa [#allocation7 + $0x1], 1 }

</bundles_post_ra>
